<compile_context>
chip_gen: v6e
topology: v6e:2x2x1
jax: 0.10.0
libtpu: 0.0.40
codegen_flags: <defaults>
</compile_context>

<pallas_src>
import functools

import jax
import jax.numpy as jnp
from jax.experimental import pallas as pl
from jax.experimental.pallas import tpu as pltpu

BN_EPS = 1e-5  # PyTorch BatchNorm2d default eps


# --------------------------------------------------------------------------
# Small helpers
# --------------------------------------------------------------------------
@functools.lru_cache(maxsize=None)
def _vmem_limit_bytes():
    """Generation-aware scoped-VMEM limit (~80% of physical capacity)."""
    try:
        cap = int(pltpu.get_tpu_info().vmem_capacity_bytes)
    except Exception:            # non-TPU / older runtimes: conservative value
        cap = 64 * 1024 * 1024
    return max(32 * 1024 * 1024, int(cap * 0.8))


def _buffered_spec(block_shape, index_map, nbuf):
    """BlockSpec with deeper multi-buffering where this JAX supports it."""
    try:
        return pl.BlockSpec(block_shape, index_map, pipeline_mode=pl.Buffered(nbuf))
    except Exception:
        return pl.BlockSpec(block_shape, index_map)


def _choose_row_tile(H, W, Cin, Cout, itemsize, batch):
    """Even divisor of H: largest tile whose per-step working set stays small
    (v7x has only 64 MiB VMEM, and the f32 accumulator must stay out of deep
    vreg-spill territory) while keeping >= ~8 grid steps so both v7x
    TensorCores are fed even at small batch."""
    acc_budget = 512 * 1024          # f32 accumulator per tile
    buf_budget = 4 * 1024 * 1024     # padded scratch / double-buffered blocks
    cands = [t for t in range(2, H + 1, 2) if H % t == 0]
    if not cands:
        return H

    def fits(t):
        pad = (t + 2) * (W + 2) * Cin * itemsize
        blk = t * W * max(Cin, Cout) * itemsize
        acc = t * W * Cout * 4
        return pad <= buf_budget and blk <= buf_budget and acc <= acc_budget

    fit = [t for t in cands if fits(t)] or [cands[0]]
    deep = [t for t in fit if batch * (H // t) >= 8] or [fit[0]]
    return max(deep)


# --------------------------------------------------------------------------
# Conv stage: [fused BN+ReLU of previous stage] -> pad -> 3x3 conv
# --------------------------------------------------------------------------
def _conv_kernel(*refs, TH, W, Cin, Cout, fuse_bn_relu, use_im2col):
    """One (image, row-tile) grid step.

    Emits the pre-BN conv output tile (conv_dtype) plus per-tile partial
    BatchNorm stats (sum, sum of squares, f32) so the wrapper can finalize
    exact batch statistics with a tiny cross-tile reduction.
    """
    it = iter(refs)
    body_ref, top_ref, bot_ref = next(it), next(it), next(it)
    bn_ref = next(it) if fuse_bn_relu else None
    w_ref = next(it)
    out_ref, stats_ref = next(it), next(it)
    pad_ref = next(it)
    pat_ref = next(it) if use_im2col else None

    rt = pl.program_id(1)
    nrt = pl.num_programs(1)
    pdt = pad_ref.dtype                      # conv_dtype staging buffer

    def act(v):
        # BN (previous stage) + ReLU in f32; single cast at the staging write.
        v = v.astype(jnp.float32)
        if fuse_bn_relu:
            v = jnp.maximum(v * bn_ref[0:1, :] + bn_ref[1:2, :], 0.0)
        return v.astype(pdt)

    # ---- stage the (TH+2, W+2, Cin) padded row-tile --------------------
    pad_ref[1:TH + 1, 1:W + 1, :] = act(body_ref[0])            # body rows

    zrow = jnp.zeros((1, W, Cin), pdt)

    @pl.when(rt > 0)                                            # top halo row
    def _():
        pad_ref[0:1, 1:W + 1, :] = act(top_ref[0])

    @pl.when(rt == 0)                                           # image border
    def _():
        pad_ref[0:1, 1:W + 1, :] = zrow

    @pl.when(rt < nrt - 1)                                      # bottom halo
    def _():
        pad_ref[TH + 1:TH + 2, 1:W + 1, :] = act(bot_ref[0])

    @pl.when(rt == nrt - 1)
    def _():
        pad_ref[TH + 1:TH + 2, 1:W + 1, :] = zrow

    # Left/right zero columns: tiny thin stores, kept per-step (megacore-safe).
    pad_ref[:, 0:1, :] = jnp.zeros((TH + 2, 1, Cin), pdt)
    pad_ref[:, W + 1:W + 2, :] = jnp.zeros((TH + 2, 1, Cin), pdt)

    # ---- 3x3 conv -------------------------------------------------------
    if use_im2col:
        # Small Cin: one MXU matmul with K = 9*Cin (better K-utilization than
        # nine K=Cin matmuls); the row-tiled patch scratch is tiny.
        for t in range(9):
            kh, kw = divmod(t, 3)
            pat_ref[:, t * Cin:(t + 1) * Cin] = (
                pad_ref[kh:kh + TH, kw:kw + W, :].reshape(TH * W, Cin))
        acc = jnp.dot(pat_ref[...], w_ref[...],
                      preferred_element_type=jnp.float32)       # (TH*W, Cout)
    else:
        # Large Cin: no im2col buffer at all -- accumulate nine K=Cin matmuls
        # straight from shifted views of the padded tile (no 9x duplication,
        # no staging stores through the single v5e vst slot).
        acc = None
        for t in range(9):
            kh, kw = divmod(t, 3)
            lhs = pad_ref[kh:kh + TH, kw:kw + W, :].reshape(TH * W, Cin)
            part = jnp.dot(lhs, w_ref[t * Cin:(t + 1) * Cin, :],
                           preferred_element_type=jnp.float32)
            acc = part if acc is None else acc + part

    out_ref[0] = acc.reshape(TH, W, Cout).astype(out_ref.dtype)
    # Per-tile partial BN stats; exact finalize (mean/var) in the wrapper.
    stats_ref[0, 0, 0:1, :] = jnp.sum(acc, axis=0, keepdims=True)
    stats_ref[0, 0, 1:2, :] = jnp.sum(acc * acc, axis=0, keepdims=True)


def _conv_stage(src, w_flat, bn_params, *, conv_dtype):
    """conv3x3 of `src` (optionally preceded by fused BN+ReLU with bn_params).

    Returns (pre-BN conv output (N,H,W,Cout) in conv_dtype,
             per-tile partial stats f32 (N, H/TH, 2, Cout)).
    """
    N, H, W, Cin = src.shape
    Cout = w_flat.shape[1]
    fuse = bn_params is not None
    use_im2col = Cin < 32
    itemsize = jnp.dtype(conv_dtype).itemsize
    TH = _choose_row_tile(H, W, Cin, Cout, itemsize, N)
    nrt = H // TH

    kernel = functools.partial(_conv_kernel, TH=TH, W=W, Cin=Cin, Cout=Cout,
                               fuse_bn_relu=fuse, use_im2col=use_im2col)

    # Same array three times: TH-row body + 1-row top/bottom halos.  The halo
    # index maps clamp at the image border (the kernel substitutes zeros
    # there), so the halo stays inside the automatic double-buffered pipeline.
    in_specs = [
        pl.BlockSpec((1, TH, W, Cin), lambda n, r: (n, r, 0, 0)),
        pl.BlockSpec((1, 1, W, Cin),
                     lambda n, r: (n, jnp.maximum(r * TH - 1, 0), 0, 0)),
        pl.BlockSpec((1, 1, W, Cin),
                     lambda n, r: (n, jnp.minimum(r * TH + TH, H - 1), 0, 0)),
    ]
    args = [src, src, src]
    if fuse:
        in_specs.append(pl.BlockSpec((2, Cin), lambda n, r: (0, 0)))
        args.append(bn_params)
    in_specs.append(pl.BlockSpec((9 * Cin, Cout), lambda n, r: (0, 0)))
    args.append(w_flat)

    scratch = [pltpu.VMEM((TH + 2, W + 2, Cin), conv_dtype)]       # padded tile
    if use_im2col:
        scratch.append(pltpu.VMEM((TH * W, 9 * Cin), conv_dtype))  # tiny im2col

    grid_spec = pltpu.PrefetchScalarGridSpec(
        num_scalar_prefetch=0,
        grid=(N, nrt),
        in_specs=in_specs,
        out_specs=[pl.BlockSpec((1, TH, W, Cout), lambda n, r: (n, r, 0, 0)),
                   pl.BlockSpec((1, 1, 2, Cout), lambda n, r: (n, r, 0, 0))],
        scratch_shapes=scratch,
    )
    conv_out, stats = pl.pallas_call(
        kernel,
        grid_spec=grid_spec,
        out_shape=(jax.ShapeDtypeStruct((N, H, W, Cout), conv_dtype),
                   jax.ShapeDtypeStruct((N, nrt, 2, Cout), jnp.float32)),
        compiler_params=pltpu.CompilerParams(
            dimension_semantics=("parallel", "parallel"),
            vmem_limit_bytes=_vmem_limit_bytes()),
    )(*args)
    return conv_out, stats


# --------------------------------------------------------------------------
# BN + ReLU + 2x2 pool stage
# --------------------------------------------------------------------------
def _bn_relu_pool_kernel(h_ref, bn_ref, o_ref, *, TH, W, C, pool_type):
    """Per row-tile BN + ReLU + 2x2/stride-2 pool, lane-dense output slab."""
    scale = bn_ref[0:1, :]
    shift = bn_ref[1:2, :]
    y = jnp.maximum(h_ref[0].astype(jnp.float32) * scale + shift, 0.0)

    # Row pairing via a layout-free outer-dim split; columns combined with one
    # stride-2 slice on the already row-reduced tensor.
    y = y.reshape(TH // 2, 2, W, C)
    r0, r1 = y[:, 0], y[:, 1]
    if pool_type == 'avg':
        rp = r0 + r1
        p = (rp[:, 0:W:2, :] + rp[:, 1:W:2, :]) * 0.25
    elif pool_type == 'max':
        rp = jnp.maximum(r0, r1)
        p = jnp.maximum(rp[:, 0:W:2, :], rp[:, 1:W:2, :])
    else:  # 'avg+max'
        rs = r0 + r1
        rm = jnp.maximum(r0, r1)
        p = ((rs[:, 0:W:2, :] + rs[:, 1:W:2, :]) * 0.25
             + jnp.maximum(rm[:, 0:W:2, :], rm[:, 1:W:2, :]))

    # Lane-dense store: last dim is (W/2)*C; the wrapper reshapes back to NHWC.
    o_ref[0] = p.reshape(TH // 2, (W // 2) * C).astype(o_ref.dtype)


def _pool_stage(h, bn_params, *, pool_type):
    """BN + ReLU + 2x2/stride-2 pool; returns (N, H/2, W/2, C) f32."""
    N, H, W, C = h.shape
    TH = _choose_row_tile(H, W, C, C, jnp.dtype(h.dtype).itemsize, N)
    nrt = H // TH
    kernel = functools.partial(_bn_relu_pool_kernel, TH=TH, W=W, C=C,
                               pool_type=pool_type)
    grid_spec = pltpu.PrefetchScalarGridSpec(
        num_scalar_prefetch=0,
        grid=(N, nrt),
        in_specs=[_buffered_spec((1, TH, W, C), lambda n, r: (n, r, 0, 0), 3),
                  pl.BlockSpec((2, C), lambda n, r: (0, 0))],
        out_specs=pl.BlockSpec((1, TH // 2, (W // 2) * C),
                               lambda n, r: (n, r, 0)),
    )
    slab = pl.pallas_call(
        kernel,
        grid_spec=grid_spec,
        out_shape=jax.ShapeDtypeStruct((N, H // 2, (W // 2) * C), jnp.float32),
        compiler_params=pltpu.CompilerParams(
            dimension_semantics=("parallel", "parallel"),
            vmem_limit_bytes=_vmem_limit_bytes()),
    )(h, bn_params)
    return slab.reshape(N, H // 2, W // 2, C)


# --------------------------------------------------------------------------
# Wrapper
# --------------------------------------------------------------------------
def _bn_scale_shift(partial_stats, count):
    """Finalize training-mode BatchNorm2d (gamma=1, beta=0) from partial sums."""
    s = jnp.sum(partial_stats, axis=(0, 1))                    # (2, C)
    mean = s[0] / count
    var = jnp.maximum(s[1] / count - mean * mean, 0.0)         # biased variance
    scale = jax.lax.rsqrt(var + BN_EPS)
    shift = -mean * scale
    return jnp.stack([scale, shift], axis=0).astype(jnp.float32)   # (2, C)


def conv_block_forward_nhwc(x_nhwc, w1_oihw, w2_oihw, pool_size=(2, 2),
                            pool_type='avg', conv_dtype=jnp.bfloat16):
    """ConvBlock.forward in NHWC (use this when chaining blocks so the
    NCHW<->NHWC transposes only happen at model boundaries)."""
    if pool_type not in ('avg', 'max', 'avg+max'):
        raise ValueError('Incorrect argument!')
    assert tuple(pool_size) == (2, 2), "kernel is specialized for 2x2 pooling"
    N, H, W, Cin = x_nhwc.shape
    Cout = w1_oihw.shape[0]
    assert H % 2 == 0 and W % 2 == 0, "2x2/stride-2 pooling assumes even H, W"

    x = x_nhwc.astype(conv_dtype)
    # OIHW -> flattened weights (9*Cin, Cout), K index = (kh*3 + kw)*Cin + cin,
    # matching the in-kernel tap / patch layout.
    w1 = jnp.transpose(w1_oihw, (2, 3, 1, 0)).reshape(9 * Cin, Cout).astype(conv_dtype)
    w2 = jnp.transpose(w2_oihw, (2, 3, 1, 0)).reshape(9 * Cout, Cout).astype(conv_dtype)

    count = float(N * H * W)
    h1, st1 = _conv_stage(x, w1, None, conv_dtype=conv_dtype)        # conv1
    bn1 = _bn_scale_shift(st1, count)
    h2, st2 = _conv_stage(h1, w2, bn1, conv_dtype=conv_dtype)        # bn1+relu+conv2
    bn2 = _bn_scale_shift(st2, count)
    return _pool_stage(h2, bn2, pool_type=pool_type)                 # bn2+relu+pool


def conv_block_forward(x_nchw, w1_oihw, w2_oihw, pool_size=(2, 2),
                       pool_type='avg', conv_dtype=jnp.bfloat16):
    """Pallas ConvBlock.forward with the PyTorch NCHW boundary layout."""
    x = jnp.transpose(x_nchw, (0, 2, 3, 1))
    out = conv_block_forward_nhwc(x, w1_oihw, w2_oihw, pool_size=pool_size,
                                  pool_type=pool_type, conv_dtype=conv_dtype)
    return jnp.transpose(out, (0, 3, 1, 2))


# --------------------------------------------------------------------------
# Reference & test
# --------------------------------------------------------------------------
def _xavier_uniform_conv(key, out_c, in_c, kh, kw):
    """nn.init.xavier_uniform_ for a Conv2d weight (out_c, in_c, kh, kw)."""
    fan_in = in_c * kh * kw
    fan_out = out_c * kh * kw
    bound = (6.0 / (fan_in + fan_out)) ** 0.5
    return jax.random.uniform(key, (out_c, in_c, kh, kw), jnp.float32,
                              -bound, bound)


def _reference_forward(x_nchw, w1_oihw, w2_oihw, pool_type='avg'):
    """Pure-JAX reference of the PyTorch forward (verification only)."""
    def conv(x, w):
        return jax.lax.conv_general_dilated(
            x, w, window_strides=(1, 1), padding=((1, 1), (1, 1)),
            dimension_numbers=('NCHW', 'OIHW', 'NCHW'))

    def bn_relu(y):
        mean = jnp.mean(y, axis=(0, 2, 3), keepdims=True)
        var = jnp.mean(jnp.square(y - mean), axis=(0, 2, 3), keepdims=True)
        return jnp.maximum((y - mean) * jax.lax.rsqrt(var + BN_EPS), 0.0)

    h = bn_relu(conv(x_nchw, w1_oihw))
    h = bn_relu(conv(h, w2_oihw))
    N, C, H, W = h.shape
    hr = h.reshape(N, C, H // 2, 2, W // 2, 2)
    avg = hr.mean(axis=(3, 5))
    mx = hr.max(axis=(3, 5))
    return {'avg': avg, 'max': mx, 'avg+max': avg + mx}[pool_type]


if __name__ == "__main__":
    key = jax.random.PRNGKey(0)
    k_x, k_w1, k_w2, k_x2, k_w3, k_w4 = jax.random.split(key, 6)

    # Config A: small channels -> row-tiled im2col (K = 9*Cin) path.
    N, Cin, Cout, H, W = 2, 4, 8, 16, 16
    x = jax.random.normal(k_x, (N, Cin, H, W), jnp.float32)
    w1 = _xavier_uniform_conv(k_w1, Cout, Cin, 3, 3)     # conv1.weight
    w2 = _xavier_uniform_conv(k_w2, Cout, Cout, 3, 3)    # conv2.weight

    for pool_type, dtype, tol in (("avg", jnp.float32, 2e-2),
                                  ("avg+max", jnp.float32, 2e-2),
                                  ("avg", jnp.bfloat16, 6e-2)):
        ref = _reference_forward(x, w1, w2, pool_type=pool_type)
        out = jax.block_until_ready(
            conv_block_forward(x, w1, w2, pool_size=(2, 2),
                               pool_type=pool_type, conv_dtype=dtype))
        assert out.shape == (N, Cout, H // 2, W // 2), out.shape
        if not bool(jnp.allclose(out, ref, atol=tol, rtol=tol)):
            err = float(jnp.max(jnp.abs(out - ref)))
            raise AssertionError(
                f"mismatch (pool={pool_type}, dtype={dtype}): max abs err={err}")

    # Config B: Cin >= 32 -> direct accumulating-dot path (no im2col scratch).
    N2, C2, H2, W2 = 2, 32, 16, 16
    x2 = jax.random.normal(k_x2, (N2, C2, H2, W2), jnp.float32)
    w3 = _xavier_uniform_conv(k_w3, C2, C2, 3, 3)
    w4 = _xavier_uniform_conv(k_w4, C2, C2, 3, 3)
    ref2 = _reference_forward(x2, w3, w4, pool_type="avg")
    out2 = jax.block_until_ready(
        conv_block_forward(x2, w3, w4, pool_size=(2, 2), pool_type="avg",
                           conv_dtype=jnp.float32))
    assert out2.shape == (N2, C2, H2 // 2, W2 // 2), out2.shape
    if not bool(jnp.allclose(out2, ref2, atol=3e-2, rtol=3e-2)):
        err = float(jnp.max(jnp.abs(out2 - ref2)))
        raise AssertionError(f"direct-dot path mismatch: max abs err={err}")

    print("KERNEL_OK")
</pallas_src>

<mosaic_0001>
module attributes {stable_mosaic.version = 11 : i64} {
  func.func @_conv_kernel(%arg0: i32, %arg1: i32, %arg2: memref<1x4x16x4xf32, #tpu.memory_space<vmem>>, %arg3: memref<1x1x16x4xf32, #tpu.memory_space<vmem>>, %arg4: memref<1x1x16x4xf32, #tpu.memory_space<vmem>>, %arg5: memref<36x8xf32, #tpu.memory_space<vmem>>, %arg6: memref<1x4x16x8xf32, #tpu.memory_space<vmem>>, %arg7: memref<1x1x2x8xf32, #tpu.memory_space<vmem>>, %arg8: memref<6x18x4xf32, #tpu.memory_space<vmem>>, %arg9: memref<64x36xf32, #tpu.memory_space<vmem>>) attributes {dimension_semantics = [#tpu.dimension_semantics<parallel>, #tpu.dimension_semantics<parallel>], iteration_bounds = array<i64: 2, 4>, scalar_prefetch = 0 : i64, scratch_operands = 2 : i64, tpu.core_type = #tpu.core_type<tc>, window_params = [{transform_indices = @transform_0, window_bounds = array<i64: 1, 4, 16, 4>}, {transform_indices = @transform_1, window_bounds = array<i64: 1, 1, 16, 4>}, {transform_indices = @transform_2, window_bounds = array<i64: 1, 1, 16, 4>}, {pipeline_mode = #tpu.pipeline_mode<synchronous>, transform_indices = @transform_3, window_bounds = array<i64: 36, 8>}, {transform_indices = @transform_4, window_bounds = array<i64: 1, 4, 16, 8>}, {transform_indices = @transform_5, window_bounds = array<i64: 1, 1, 2, 8>}]} {
    %c0 = arith.constant 0 : index
    %c0_0 = arith.constant 0 : index
    %c0_1 = arith.constant 0 : index
    %c0_2 = arith.constant 0 : index
    %0 = vector.load %arg2[%c0, %c0_0, %c0_1, %c0_2] : memref<1x4x16x4xf32, #tpu.memory_space<vmem>>, vector<1x4x16x4xf32>
    %1 = vector.shape_cast %0 : vector<1x4x16x4xf32> to vector<4x16x4xf32>
    %c1 = arith.constant 1 : index
    %c1_3 = arith.constant 1 : index
    %c0_4 = arith.constant 0 : index
    %2 = vector.load %arg8[%c1, %c1_3, %c0_4] : memref<6x18x4xf32, #tpu.memory_space<vmem>>, vector<4x16x4xf32>
    tpu.vector_store %arg8[%c1, %c1_3, %c0_4], %1 {strides = array<i32>} : memref<6x18x4xf32, #tpu.memory_space<vmem>>, vector<4x16x4xf32>,
    %cst = arith.constant 0.000000e+00 : f32
    %3 = vector.broadcast %cst : f32 to vector<1x16x4xf32>
    %c0_i32 = arith.constant 0 : i32
    %4 = arith.cmpi sgt, %arg1, %c0_i32 : i32
    %5 = arith.extui %4 : i1 to i32
    %c0_i32_5 = arith.constant 0 : i32
    %6 = arith.cmpi ne, %5, %c0_i32_5 : i32
    scf.if %6 {
      %c0_73 = arith.constant 0 : index
      %c0_74 = arith.constant 0 : index
      %c0_75 = arith.constant 0 : index
      %c0_76 = arith.constant 0 : index
      %65 = vector.load %arg3[%c0_73, %c0_74, %c0_75, %c0_76] : memref<1x1x16x4xf32, #tpu.memory_space<vmem>>, vector<1x1x16x4xf32>
      %66 = vector.shape_cast %65 : vector<1x1x16x4xf32> to vector<1x16x4xf32>
      %c0_77 = arith.constant 0 : index
      %c1_78 = arith.constant 1 : index
      %c0_79 = arith.constant 0 : index
      %67 = vector.load %arg8[%c0_77, %c1_78, %c0_79] : memref<6x18x4xf32, #tpu.memory_space<vmem>>, vector<1x16x4xf32>
      tpu.vector_store %arg8[%c0_77, %c1_78, %c0_79], %66 {strides = array<i32>} : memref<6x18x4xf32, #tpu.memory_space<vmem>>, vector<1x16x4xf32>,
    } else {
    }
    %c0_i32_6 = arith.constant 0 : i32
    %7 = arith.cmpi eq, %arg1, %c0_i32_6 : i32
    %8 = arith.extui %7 : i1 to i32
    %c0_i32_7 = arith.constant 0 : i32
    %9 = arith.cmpi ne, %8, %c0_i32_7 : i32
    scf.if %9 {
      %c0_73 = arith.constant 0 : index
      %c1_74 = arith.constant 1 : index
      %c0_75 = arith.constant 0 : index
      %65 = vector.load %arg8[%c0_73, %c1_74, %c0_75] : memref<6x18x4xf32, #tpu.memory_space<vmem>>, vector<1x16x4xf32>
      tpu.vector_store %arg8[%c0_73, %c1_74, %c0_75], %3 {strides = array<i32>} : memref<6x18x4xf32, #tpu.memory_space<vmem>>, vector<1x16x4xf32>,
    } else {
    }
    %c3_i32 = arith.constant 3 : i32
    %10 = arith.cmpi slt, %arg1, %c3_i32 : i32
    %11 = arith.extui %10 : i1 to i32
    %c0_i32_8 = arith.constant 0 : i32
    %12 = arith.cmpi ne, %11, %c0_i32_8 : i32
    scf.if %12 {
      %c0_73 = arith.constant 0 : index
      %c0_74 = arith.constant 0 : index
      %c0_75 = arith.constant 0 : index
      %c0_76 = arith.constant 0 : index
      %65 = vector.load %arg4[%c0_73, %c0_74, %c0_75, %c0_76] : memref<1x1x16x4xf32, #tpu.memory_space<vmem>>, vector<1x1x16x4xf32>
      %66 = vector.shape_cast %65 : vector<1x1x16x4xf32> to vector<1x16x4xf32>
      %c5 = arith.constant 5 : index
      %c1_77 = arith.constant 1 : index
      %c0_78 = arith.constant 0 : index
      %67 = vector.load %arg8[%c5, %c1_77, %c0_78] : memref<6x18x4xf32, #tpu.memory_space<vmem>>, vector<1x16x4xf32>
      tpu.vector_store %arg8[%c5, %c1_77, %c0_78], %66 {strides = array<i32>} : memref<6x18x4xf32, #tpu.memory_space<vmem>>, vector<1x16x4xf32>,
    } else {
    }
    %c3_i32_9 = arith.constant 3 : i32
    %13 = arith.cmpi eq, %arg1, %c3_i32_9 : i32
    %14 = arith.extui %13 : i1 to i32
    %c0_i32_10 = arith.constant 0 : i32
    %15 = arith.cmpi ne, %14, %c0_i32_10 : i32
    scf.if %15 {
      %c5 = arith.constant 5 : index
      %c1_73 = arith.constant 1 : index
      %c0_74 = arith.constant 0 : index
      %65 = vector.load %arg8[%c5, %c1_73, %c0_74] : memref<6x18x4xf32, #tpu.memory_space<vmem>>, vector<1x16x4xf32>
      tpu.vector_store %arg8[%c5, %c1_73, %c0_74], %3 {strides = array<i32>} : memref<6x18x4xf32, #tpu.memory_space<vmem>>, vector<1x16x4xf32>,
    } else {
    }
    %cst_11 = arith.constant 0.000000e+00 : f32
    %16 = vector.broadcast %cst_11 : f32 to vector<6x1x4xf32>
    %c0_12 = arith.constant 0 : index
    %c0_13 = arith.constant 0 : index
    %c0_14 = arith.constant 0 : index
    %17 = vector.load %arg8[%c0_12, %c0_13, %c0_14] : memref<6x18x4xf32, #tpu.memory_space<vmem>>, vector<6x1x4xf32>
    tpu.vector_store %arg8[%c0_12, %c0_13, %c0_14], %16 {strides = array<i32>} : memref<6x18x4xf32, #tpu.memory_space<vmem>>, vector<6x1x4xf32>,
    %cst_15 = arith.constant 0.000000e+00 : f32
    %18 = vector.broadcast %cst_15 : f32 to vector<6x1x4xf32>
    %c0_16 = arith.constant 0 : index
    %c17 = arith.constant 17 : index
    %c0_17 = arith.constant 0 : index
    %19 = vector.load %arg8[%c0_16, %c17, %c0_17] : memref<6x18x4xf32, #tpu.memory_space<vmem>>, vector<6x1x4xf32>
    tpu.vector_store %arg8[%c0_16, %c17, %c0_17], %18 {strides = array<i32>} : memref<6x18x4xf32, #tpu.memory_space<vmem>>, vector<6x1x4xf32>,
    %c0_18 = arith.constant 0 : index
    %c0_19 = arith.constant 0 : index
    %c0_20 = arith.constant 0 : index
    %20 = vector.load %arg8[%c0_18, %c0_19, %c0_20] : memref<6x18x4xf32, #tpu.memory_space<vmem>>, vector<4x16x4xf32>
    %21 = vector.shape_cast %20 : vector<4x16x4xf32> to vector<64x4xf32>
    %c0_21 = arith.constant 0 : index
    %c0_22 = arith.constant 0 : index
    %22 = vector.load %arg9[%c0_21, %c0_22] : memref<64x36xf32, #tpu.memory_space<vmem>>, vector<64x4xf32>
    tpu.vector_store %arg9[%c0_21, %c0_22], %21 {strides = array<i32>} : memref<64x36xf32, #tpu.memory_space<vmem>>, vector<64x4xf32>,
    %c0_23 = arith.constant 0 : index
    %c1_24 = arith.constant 1 : index
    %c0_25 = arith.constant 0 : index
    %23 = vector.load %arg8[%c0_23, %c1_24, %c0_25] : memref<6x18x4xf32, #tpu.memory_space<vmem>>, vector<4x16x4xf32>
    %24 = vector.shape_cast %23 : vector<4x16x4xf32> to vector<64x4xf32>
    %c0_26 = arith.constant 0 : index
    %c4 = arith.constant 4 : index
    %25 = vector.load %arg9[%c0_26, %c4] : memref<64x36xf32, #tpu.memory_space<vmem>>, vector<64x4xf32>
    tpu.vector_store %arg9[%c0_26, %c4], %24 {strides = array<i32>} : memref<64x36xf32, #tpu.memory_space<vmem>>, vector<64x4xf32>,
    %c0_27 = arith.constant 0 : index
    %c2 = arith.constant 2 : index
    %c0_28 = arith.constant 0 : index
    %26 = vector.load %arg8[%c0_27, %c2, %c0_28] : memref<6x18x4xf32, #tpu.memory_space<vmem>>, vector<4x16x4xf32>
    %27 = vector.shape_cast %26 : vector<4x16x4xf32> to vector<64x4xf32>
    %c0_29 = arith.constant 0 : index
    %c8 = arith.constant 8 : index
    %28 = vector.load %arg9[%c0_29, %c8] : memref<64x36xf32, #tpu.memory_space<vmem>>, vector<64x4xf32>
    tpu.vector_store %arg9[%c0_29, %c8], %27 {strides = array<i32>} : memref<64x36xf32, #tpu.memory_space<vmem>>, vector<64x4xf32>,
    %c1_30 = arith.constant 1 : index
    %c0_31 = arith.constant 0 : index
    %c0_32 = arith.constant 0 : index
    %29 = vector.load %arg8[%c1_30, %c0_31, %c0_32] : memref<6x18x4xf32, #tpu.memory_space<vmem>>, vector<4x16x4xf32>
    %30 = vector.shape_cast %29 : vector<4x16x4xf32> to vector<64x4xf32>
    %c0_33 = arith.constant 0 : index
    %c12 = arith.constant 12 : index
    %31 = vector.load %arg9[%c0_33, %c12] : memref<64x36xf32, #tpu.memory_space<vmem>>, vector<64x4xf32>
    tpu.vector_store %arg9[%c0_33, %c12], %30 {strides = array<i32>} : memref<64x36xf32, #tpu.memory_space<vmem>>, vector<64x4xf32>,
    %c1_34 = arith.constant 1 : index
    %c1_35 = arith.constant 1 : index
    %c0_36 = arith.constant 0 : index
    %32 = vector.load %arg8[%c1_34, %c1_35, %c0_36] : memref<6x18x4xf32, #tpu.memory_space<vmem>>, vector<4x16x4xf32>
    %33 = vector.shape_cast %32 : vector<4x16x4xf32> to vector<64x4xf32>
    %c0_37 = arith.constant 0 : index
    %c16 = arith.constant 16 : index
    %34 = vector.load %arg9[%c0_37, %c16] : memref<64x36xf32, #tpu.memory_space<vmem>>, vector<64x4xf32>
    tpu.vector_store %arg9[%c0_37, %c16], %33 {strides = array<i32>} : memref<64x36xf32, #tpu.memory_space<vmem>>, vector<64x4xf32>,
    %c1_38 = arith.constant 1 : index
    %c2_39 = arith.constant 2 : index
    %c0_40 = arith.constant 0 : index
    %35 = vector.load %arg8[%c1_38, %c2_39, %c0_40] : memref<6x18x4xf32, #tpu.memory_space<vmem>>, vector<4x16x4xf32>
    %36 = vector.shape_cast %35 : vector<4x16x4xf32> to vector<64x4xf32>
    %c0_41 = arith.constant 0 : index
    %c20 = arith.constant 20 : index
    %37 = vector.load %arg9[%c0_41, %c20] : memref<64x36xf32, #tpu.memory_space<vmem>>, vector<64x4xf32>
    tpu.vector_store %arg9[%c0_41, %c20], %36 {strides = array<i32>} : memref<64x36xf32, #tpu.memory_space<vmem>>, vector<64x4xf32>,
    %c2_42 = arith.constant 2 : index
    %c0_43 = arith.constant 0 : index
    %c0_44 = arith.constant 0 : index
    %38 = vector.load %arg8[%c2_42, %c0_43, %c0_44] : memref<6x18x4xf32, #tpu.memory_space<vmem>>, vector<4x16x4xf32>
    %39 = vector.shape_cast %38 : vector<4x16x4xf32> to vector<64x4xf32>
    %c0_45 = arith.constant 0 : index
    %c24 = arith.constant 24 : index
    %40 = vector.load %arg9[%c0_45, %c24] : memref<64x36xf32, #tpu.memory_space<vmem>>, vector<64x4xf32>
    tpu.vector_store %arg9[%c0_45, %c24], %39 {strides = array<i32>} : memref<64x36xf32, #tpu.memory_space<vmem>>, vector<64x4xf32>,
    %c2_46 = arith.constant 2 : index
    %c1_47 = arith.constant 1 : index
    %c0_48 = arith.constant 0 : index
    %41 = vector.load %arg8[%c2_46, %c1_47, %c0_48] : memref<6x18x4xf32, #tpu.memory_space<vmem>>, vector<4x16x4xf32>
    %42 = vector.shape_cast %41 : vector<4x16x4xf32> to vector<64x4xf32>
    %c0_49 = arith.constant 0 : index
    %c28 = arith.constant 28 : index
    %43 = vector.load %arg9[%c0_49, %c28] : memref<64x36xf32, #tpu.memory_space<vmem>>, vector<64x4xf32>
    tpu.vector_store %arg9[%c0_49, %c28], %42 {strides = array<i32>} : memref<64x36xf32, #tpu.memory_space<vmem>>, vector<64x4xf32>,
    %c2_50 = arith.constant 2 : index
    %c2_51 = arith.constant 2 : index
    %c0_52 = arith.constant 0 : index
    %44 = vector.load %arg8[%c2_50, %c2_51, %c0_52] : memref<6x18x4xf32, #tpu.memory_space<vmem>>, vector<4x16x4xf32>
    %45 = vector.shape_cast %44 : vector<4x16x4xf32> to vector<64x4xf32>
    %c0_53 = arith.constant 0 : index
    %c32 = arith.constant 32 : index
    %46 = vector.load %arg9[%c0_53, %c32] : memref<64x36xf32, #tpu.memory_space<vmem>>, vector<64x4xf32>
    tpu.vector_store %arg9[%c0_53, %c32], %45 {strides = array<i32>} : memref<64x36xf32, #tpu.memory_space<vmem>>, vector<64x4xf32>,
    %c0_54 = arith.constant 0 : index
    %c0_55 = arith.constant 0 : index
    %47 = vector.load %arg9[%c0_54, %c0_55] : memref<64x36xf32, #tpu.memory_space<vmem>>, vector<64x36xf32>
    %c0_56 = arith.constant 0 : index
    %c0_57 = arith.constant 0 : index
    %48 = vector.load %arg5[%c0_56, %c0_57] : memref<36x8xf32, #tpu.memory_space<vmem>>, vector<36x8xf32>
    %cst_58 = arith.constant dense<0.000000e+00> : vector<64x8xf32>
    %49 = tpu.matmul %47, %48, %cst_58 {dimension_numbers = #tpu.dot_dimension_numbers<[1], [0], [0], [1], [0, 0, 1, 1], [], []>} : vector<64x36xf32>, vector<36x8xf32>, vector<64x8xf32> -> vector<64x8xf32>
    %50 = vector.shape_cast %49 : vector<64x8xf32> to vector<4x16x8xf32>
    %c0_59 = arith.constant 0 : index
    %c0_60 = arith.constant 0 : index
    %c0_61 = arith.constant 0 : index
    %c0_62 = arith.constant 0 : index
    %51 = vector.load %arg6[%c0_59, %c0_60, %c0_61, %c0_62] : memref<1x4x16x8xf32, #tpu.memory_space<vmem>>, vector<1x4x16x8xf32>
    %52 = vector.shape_cast %51 : vector<1x4x16x8xf32> to vector<4x16x8xf32>
    %53 = vector.shape_cast %50 : vector<4x16x8xf32> to vector<1x4x16x8xf32>
    tpu.vector_store %arg6[%c0_59, %c0_60, %c0_61, %c0_62], %53 {strides = array<i32>} : memref<1x4x16x8xf32, #tpu.memory_space<vmem>>, vector<1x4x16x8xf32>,
    %cst_63 = arith.constant dense<0.000000e+00> : vector<8xf32>
    %54 = vector.multi_reduction <add>, %49, %cst_63 [0] : vector<64x8xf32> to vector<8xf32>
    %55 = vector.shape_cast %54 : vector<8xf32> to vector<1x8xf32>
    %c0_64 = arith.constant 0 : index
    %c0_65 = arith.constant 0 : index
    %c0_66 = arith.constant 0 : index
    %c0_67 = arith.constant 0 : index
    %56 = vector.load %arg7[%c0_64, %c0_65, %c0_66, %c0_67] : memref<1x1x2x8xf32, #tpu.memory_space<vmem>>, vector<1x1x1x8xf32>
    %57 = vector.shape_cast %56 : vector<1x1x1x8xf32> to vector<1x8xf32>
    %58 = vector.shape_cast %55 : vector<1x8xf32> to vector<1x1x1x8xf32>
    tpu.vector_store %arg7[%c0_64, %c0_65, %c0_66, %c0_67], %58 {strides = array<i32>} : memref<1x1x2x8xf32, #tpu.memory_space<vmem>>, vector<1x1x1x8xf32>,
    %59 = arith.mulf %49, %49 : vector<64x8xf32>
    %cst_68 = arith.constant dense<0.000000e+00> : vector<8xf32>
    %60 = vector.multi_reduction <add>, %59, %cst_68 [0] : vector<64x8xf32> to vector<8xf32>
    %61 = vector.shape_cast %60 : vector<8xf32> to vector<1x8xf32>
    %c0_69 = arith.constant 0 : index
    %c0_70 = arith.constant 0 : index
    %c1_71 = arith.constant 1 : index
    %c0_72 = arith.constant 0 : index
    %62 = vector.load %arg7[%c0_69, %c0_70, %c1_71, %c0_72] : memref<1x1x2x8xf32, #tpu.memory_space<vmem>>, vector<1x1x1x8xf32>
    %63 = vector.shape_cast %62 : vector<1x1x1x8xf32> to vector<1x8xf32>
    %64 = vector.shape_cast %61 : vector<1x8xf32> to vector<1x1x1x8xf32>
    tpu.vector_store %arg7[%c0_69, %c0_70, %c1_71, %c0_72], %64 {strides = array<i32>} : memref<1x1x2x8xf32, #tpu.memory_space<vmem>>, vector<1x1x1x8xf32>,
    return
  }
  func.func @transform_0(%arg0: i32, %arg1: i32) -> (i32, i32, i32, i32) {
    %c0_i32 = arith.constant 0 : i32
    %c0_i32_0 = arith.constant 0 : i32
    %c0_i32_1 = arith.constant 0 : i32
    return %arg0, %arg1, %c0_i32, %c0_i32_0 : i32, i32, i32, i32
  }
  func.func @transform_1(%arg0: i32, %arg1: i32) -> (i32, i32, i32, i32) {
    %c4_i32 = arith.constant 4 : i32
    %0 = arith.muli %arg1, %c4_i32 : i32
    %c1_i32 = arith.constant 1 : i32
    %1 = arith.subi %0, %c1_i32 : i32
    %c0_i32 = arith.constant 0 : i32
    %2 = arith.maxsi %1, %c0_i32 : i32
    %c0_i32_0 = arith.constant 0 : i32
    %c0_i32_1 = arith.constant 0 : i32
    %c0_i32_2 = arith.constant 0 : i32
    return %arg0, %2, %c0_i32_0, %c0_i32_1 : i32, i32, i32, i32
  }
  func.func @transform_2(%arg0: i32, %arg1: i32) -> (i32, i32, i32, i32) {
    %c4_i32 = arith.constant 4 : i32
    %0 = arith.muli %arg1, %c4_i32 : i32
    %c4_i32_0 = arith.constant 4 : i32
    %1 = arith.addi %0, %c4_i32_0 : i32
    %c15_i32 = arith.constant 15 : i32
    %2 = arith.minsi %1, %c15_i32 : i32
    %c0_i32 = arith.constant 0 : i32
    %c0_i32_1 = arith.constant 0 : i32
    %c0_i32_2 = arith.constant 0 : i32
    return %arg0, %2, %c0_i32, %c0_i32_1 : i32, i32, i32, i32
  }
  func.func @transform_3(%arg0: i32, %arg1: i32) -> (i32, i32) {
    %c0_i32 = arith.constant 0 : i32
    %c0_i32_0 = arith.constant 0 : i32
    %c0_i32_1 = arith.constant 0 : i32
    return %c0_i32, %c0_i32_0 : i32, i32
  }
  func.func @transform_4(%arg0: i32, %arg1: i32) -> (i32, i32, i32, i32) {
    %c0_i32 = arith.constant 0 : i32
    %c0_i32_0 = arith.constant 0 : i32
    %c0_i32_1 = arith.constant 0 : i32
    return %arg0, %arg1, %c0_i32, %c0_i32_0 : i32, i32, i32, i32
  }
  func.func @transform_5(%arg0: i32, %arg1: i32) -> (i32, i32, i32, i32) {
    %c0_i32 = arith.constant 0 : i32
    %c0_i32_0 = arith.constant 0 : i32
    %c0_i32_1 = arith.constant 0 : i32
    return %arg0, %arg1, %c0_i32, %c0_i32_0 : i32, i32, i32, i32
  }
}

</mosaic_0001>

<bundles_post_ra>
// kernel: tpu_custom_call.1
= control target key start
LH: loop header
LB: loop body
LE: loop exit
PB: predicated region body
PF: predicated region fallthrough
CT: control target
= control target key end

     0   :  { %s1996_s0 = inlined_call_operand.vmem [shape: f32[2,16,16,4], index: 0, kind: input, shape index: {}]   ;;  %s1997_s1 = inlined_call_operand.vmem [shape: f32[2,16,16,4], index: 1, kind: input, shape index: {}]   ;;  %s1998_s2 = inlined_call_operand.vmem [shape: f32[2,16,16,4], index: 2, kind: input, shape index: {}]   ;;  %s1999_s3 = inlined_call_operand.vmem [shape: f32[36,8], index: 3, kind: input, shape index: {}]   ;;  %s2000_s4 = inlined_call_operand.vmem [shape: f32[2,16,16,8], index: 4, kind: output, shape index: {0}]   ;;  %s2001_s5 = inlined_call_operand.hbm [shape: f32[2,4,2,8], index: 5, kind: output, shape index: {1}]  }
   0x1   :  { %2010 = sst [smem:[#allocation15_spill]] %s1996_s0 }
   0x2   :  { %11 = vsyncpa [#allocation5], 0 }
   0x3   :  { %13 = vsyncpa [#allocation5 + $0x1], 0  ;;  %s1600_s18 = smov 0   ;;  %s1602_s19 = smov 0  }
   0x4   :  { %s1604_s20 = smov 0   ;;  %s1606_s21 = smov 0  }
   0x5   :  { %s1608_s22 = smov 0   ;;  %s1610_s23 = smov 0  }
   0x6   :  { %s1612_s24 = smov 0   ;;  %s1614_s25 = smov 0  }
   0x7 LB: > { %2011 = sst [smem:[#allocation7_spill]] %s1528_s18  ;;  %s1280_s26 = sadd.s32 4294967295, %s1556_s25   ;;  %s1556_s25 = sphi %s1614_s25, %s19_s25   ;;  %s1552_s24 = sphi %s1612_s24, %s2031_s24   ;;  %s1548_s23 = sphi %s1610_s23, %s2030_s23   ;;  %s1544_s22 = sphi %s1608_s22, %s2029_s22   ;;  %s1540_s21 = sphi %s1606_s21, %s2028_s21   ;;  %s1536_s20 = sphi %s1604_s20, %s2027_s20   ;;  %s1532_s19 = sphi %s1602_s19, %s2033_s19   ;;  %s1528_s18 = sphi %s1600_s18, %s2032_s18  }
   0x8   : > { %2012 = sst [smem:[#allocation8_spill]] %s1536_s20  ;;  %s1281_s27 = sadd.s32 4294967294, %s1556_s25  }
   0x9   : > { %2013 = sst [smem:[#allocation9_spill]] %s1548_s23  ;;  %s28_s28 = sadd.s32 1, %s1548_s23 }
   0xa   : > { %2014 = sst [smem:[#allocation10_spill]] %s1552_s24  ;;  %p29_p0 = scmp.ge.s32.totalorder %s28_s28, 4 }
   0xb   : > { %s31_s29 = sadd.s32 1, %s1552_s24  ;;  %p199_p1 = scmp.ne.s32.totalorder %s1536_s20, %s1532_s19 }
   0xc   : > { %p200_p2 = scmp.eq.s32.totalorder %s1280_s26, 7  ;;  %s2035_s28 = smov (%p29_p0, %s28_s28), 0 }
   0xd   : > { %2015 = sst [smem:[#allocation11_spill]] %s2035_s28  ;;  %s2037_s29 = smov (!%p29_p0, %s31_s29), %s1552_s24 }
   0xe   : > { %s185_s30 = ssub.s32 %s1548_s23, %s2035_s28  ;;  %p1651_p3 = por %p200_p2, %p199_p1 }
   0xf   : > { %p33_p4 = scmp.ge.s32.totalorder %s2037_s29, 2  ;;  %p205_p5 = scmp.ne.s32.totalorder %s1532_s19, %s1528_s18 }
  0x10   : > { %p206_p6 = scmp.eq.s32.totalorder %s1281_s27, 7  ;;  %p1290_p7 = scmp.ge.s32.totalorder %s1556_s25, 1 }
  0x11   : > { %s2039_s29 = smov (%p33_p4, %s2037_s29), 0  ;;  %p281_p9 = scmp.lt.s32.totalorder %s1556_s25, 9 }
  0x12   : > { %2017 = sst [smem:[#allocation12_spill]] %s2039_s29  ;;  %p1660_p8 = por %p206_p6, %p205_p5 }
  0x13   : > { %s184_s8 = ssub.s32 %s1552_s24, %s2039_s29  ;;  %s189_s9 = sadd.s32 1, %s1536_s20 }
  0x14   : > { %s2018_s7 = scalar_select %p1660_p8, 1, 0 }
  0x15   : > { %s186_s10 = sor.u32 %s185_s30, %s184_s8  ;;  %p282_p10 = pnand %p1290_p7, %p281_p9 }
  0x16   : > { %2019 = sst [smem:[#allocation13_spill]] %s2018_s7  ;;  %p187_p11 = scmp.eq.s32.totalorder %s186_s10, 0 }
  0x17   : > { %285 = sbr.rel (%p282_p10) target bundleno = 554 (0x22a), region = 36  ;;  %s2002_s12 = sand.u32 (!%p282_p10), 1, %s1532_s19  }
  0x18   : > { %s1669_s11 = scalar_select %p187_p11, %s1536_s20, %s189_s9  }
  0x19   : > { %s1292_s13 = sshll.u32 (!%p282_p10), %s1540_s21, 2  ;;  %s1675_s14 = sshll.u32 (!%p282_p10), %s2002_s12, 1 }
  0x1a   : > { %2020 = sst [smem:[#allocation14_spill]] %s1669_s11  ;;  %p351_p12 = scmp.lt.s32.totalorder (!%p282_p10), %s1544_s22, 1 }
  0x1b   : > { %p353_p13 = scmp.lt.s32.totalorder (!%p282_p10), %s1292_s13, 15  ;;  %s1297_s26 = sadd.s32 (!%p282_p10), 4294967295, %s1292_s13 }
  0x1c   : > { %s352_s15 = scalar_select %p351_p12, %s1544_s22, 1  ;;  %vm415_vm0 = vcmask 31744  }
  0x1d   : > { %s354_s16 = scalar_select %p353_p13, %s1292_s13, 15 }
  0x1e   : > { %s1679_s17 = sshll.u32 %s352_s15, 5  ;;  %p363_p0 = scmp.gt.s32.totalorder %s1297_s26, 0 }
  0x1f   : > { %s1293_s27 = sshll.u32 %s354_s16, 1  ;;  %p1298_p1 = scmp.lt.s32.totalorder %s1297_s26, 15 }
  0x20   : > { %s1682_s30 = sadd.s32 %s1679_s17, %s1293_s27  ;;  %s379_s9 = sadd.s32 4, %s1292_s13 }
  0x21   : > { %s1295_s8 = sshll.u32 %s1682_s30, 3  ;;  %s2021_s0 = sld [smem:[#allocation15_spill]] }
  0x22   : > { %p1688_p2 = scmp.lt.s32.totalorder %s379_s9, 15  ;;  %s1719_s18 = scalar_lea.vmem [#allocation4], %s1675_s14 }
  0x23   : > { %s364_s15 = scalar_select %p363_p0, %s1297_s26, 0 }
  0x24   : > { %s2041_s9 = smov (!%p1688_p2, %s379_s9), 15  ;;  %s1708_s26 = scalar_lea.vmem %s2000_s4, %s1295_s8 }
  0x25   : > { %s2043_s15 = smov (!%p1298_p1, %s364_s15), 15  ;;  %s2045_s9 = smov (!%p1688_p2, %s2041_s9), 15 }
  0x26   : > { %s1303_s12 = sshll.u32 %s2043_s15, 1  ;;  %s1310_s30 = sshll.u32 %s2045_s9, 1 }
  0x27   : > { %s359_s29 = scalar_lea.vmem %s2021_s0, %s1295_s8  ;;  %s371_s27 = sadd.s32 %s1303_s12, %s1679_s17 }
  0x28   : > { %v406_v0 = vld [vmem:[%s359_s29] sm:$0xff]  ;;  %v407_v1 = vld [vmem:[%s359_s29 + $0x8] sm:$0xff]  ;;  %v408_v2 = vld [vmem:[%s359_s29 + $0x10] sm:$0xff]  ;;  %s1305_s10 = sshll.u32 %s371_s27, 3  ;;  %s388_s0 = sadd.s32 %s1310_s30, %s1679_s17 }
  0x29   : > { %416 = vst.msk [vmem:[#allocation2 + $0x19] sm:$0xff] %vm415_vm0, %v406_v0  ;;  %417 = vst.msk [vmem:[#allocation2 + $0x21] sm:$0xff] %vm415_vm0, %v407_v1  ;;  %v409_v3 = vld [vmem:[%s359_s29 + $0x18] sm:$0xff]  ;;  %v410_v4 = vld [vmem:[%s359_s29 + $0x20] sm:$0xff]  ;;  %s1312_s28 = sshll.u32 %s388_s0, 3  ;;  %p1317_p4 = scmp.le.s32.totalorder %s1540_s21, 0 }
  0x2a   : > { %418 = vst.msk [vmem:[#allocation2 + $0x31] sm:$0xff] %vm415_vm0, %v408_v2  ;;  %v411_v5 = vld [vmem:[%s359_s29 + $0x28] sm:$0xff]  ;;  %419 = vst.msk [vmem:[#allocation2 + $0x39] sm:$0xff] %vm415_vm0, %v409_v3  ;;  %v412_v6 = vld [vmem:[%s359_s29 + $0x30] sm:$0xff]  ;;  %s390_s7 = scalar_lea.vmem %s1998_s2, %s1312_s28 }
  0x2b   : > { %420 = vst.msk [vmem:[#allocation2 + $0x49] sm:$0xff] %vm415_vm0, %v410_v4  ;;  %421 = vst.msk [vmem:[#allocation2 + $0x51] sm:$0xff] %vm415_vm0, %v411_v5  ;;  %v413_v7 = vld [vmem:[%s359_s29 + $0x38] sm:$0xff]  ;;  %s373_s29 = scalar_lea.vmem %s1997_s1, %s1305_s10  ;;  %427 = sbr.rel (%p1317_p4) target bundleno = 50 (0x32), region = 40 }
  0x2c   : > { %422 = vst.msk [vmem:[#allocation2 + $0x61] sm:$0xff] %vm415_vm0, %v412_v6  ;;  %423 = vst.msk [vmem:[#allocation2 + $0x69] sm:$0xff] %vm415_vm0, %v413_v7 }
  0x30   : > { %v428_v8 = vld [vmem:[%s373_s29] sm:$0xff]  ;;  %v429_v9 = vld [vmem:[%s373_s29 + $0x8] sm:$0xff] }
  0x31   : > { %430 = vst.msk [vmem:[#allocation2 + $0x1] sm:$0xff] %vm415_vm0, %v428_v8  ;;  %431 = vst.msk [vmem:[#allocation2 + $0x9] sm:$0xff] %vm415_vm0, %v429_v9 }
  0x32 PF: > { %p1318_p5 = scmp.ne.s32.totalorder %s1540_s21, 0 }
  0x34   : > { %435 = sbr.rel (%p1318_p5) target bundleno = 59 (0x3b), region = 44 }
  0x39   : > { %v1558_v10 = vmov 0.0  }
  0x3a   : > { %436 = vst.msk [vmem:[#allocation2 + $0x1] sm:$0xff] %vm415_vm0, %v1558_v10  ;;  %437 = vst.msk [vmem:[#allocation2 + $0x9] sm:$0xff] %vm415_vm0, %v1558_v10 }
  0x3b PF: > { %p1319_p6 = scmp.ge.s32.totalorder %s1540_s21, 3 }
  0x3d   : > { %441 = sbr.rel (%p1319_p6) target bundleno = 68 (0x44), region = 48 }
  0x42   : > { %v442_v11 = vld [vmem:[%s390_s7] sm:$0xff]  ;;  %v443_v12 = vld [vmem:[%s390_s7 + $0x8] sm:$0xff] }
  0x43   : > { %445 = vst.msk [vmem:[#allocation2 + $0x79] sm:$0xff] %vm415_vm0, %v442_v11  ;;  %446 = vst.msk [vmem:[#allocation2 + $0x81] sm:$0xff] %vm415_vm0, %v443_v12 }
  0x44 PF: > { %p1320_p7 = scmp.ne.s32.totalorder %s1540_s21, 3 }
  0x46   : > { %450 = sbr.rel (%p1320_p7) target bundleno = 77 (0x4d), region = 52 }
  0x4b   : > { %v1559_v13 = vmov 0.0  }
  0x4c   : > { %452 = vst.msk [vmem:[#allocation2 + $0x79] sm:$0xff] %vm415_vm0, %v1559_v13  ;;  %453 = vst.msk [vmem:[#allocation2 + $0x81] sm:$0xff] %vm415_vm0, %v1559_v13 }
  0x4d PF: > { %v532_v14 = vld [vmem:[#allocation2 + $0x2] sm:$0xff]  ;;  %vm454_vm1 = vcmask 24576   ;;  %s1560_s0 = smov 8   ;;  %s1561_s20 = smov 4   ;;  %v1562_v18 = vmov 0.0   ;;  %v730_v19 = vld [vmem:[#allocation2 + $0x38] sm:$0xff] }
  0x4e   : > { %v483_v15 = vld [vmem:[#allocation2 + $0x1] sm:$0xff]  ;;  %548 = vrot.lane.b32.xlu1 %v532_v14, %s1560_s0  ;;  %v484_v17 = vld [vmem:[#allocation2 + $0x9] sm:$0xff]  ;;  %461 = vst.msk [vmem:[#allocation2 + $0x11] sm:$0x1] %vm454_vm1, %v1562_v18  ;;  %455 = vst.msk [vmem:[#allocation2] sm:$0x1] %vm454_vm1, %v1562_v18 }
  0x4f   : > { %v582_v16 = vld [vmem:[#allocation2 + $0x20] sm:$0xff]  ;;  %499 = vrot.lane.b32.xlu0 %v483_v15, %s1561_s20  ;;  %456 = vst.msk [vmem:[#allocation2 + $0x18] sm:$0x1] %vm454_vm1, %v1562_v18  ;;  %457 = vst.msk [vmem:[#allocation2 + $0x30] sm:$0x1] %vm454_vm1, %v1562_v18  ;;  %v1749_v20 = vld [vmem:[#allocation2 + $0x50] sm:$0xff] }
  0x50   : > { %478 = vst.msk [vmem:[#allocation3 + $0x18] sm:$0xff] %vm415_vm0, %v582_v16  ;;  %480 = vst.msk [vmem:[#allocation3 + $0x28] sm:$0xff] %vm415_vm0, %v730_v19  ;;  %s1563_s23 = smov 12   ;;  %v468_v21 = vld [vmem:[#allocation2 + $0x8] sm:$0xff]  ;;  %v485_v26 = vld [vmem:[#allocation2 + $0x19] sm:$0xff]  ;;  %s1564_s24 = smov 16  }
  0x51   : > { %458 = vst.msk [vmem:[#allocation2 + $0x48] sm:$0x1] %vm454_vm1, %v1562_v18  ;;  %459 = vst.msk [vmem:[#allocation2 + $0x60] sm:$0x1] %vm454_vm1, %v1562_v18  ;;  %v679_v28 = vld [vmem:[#allocation2 + $0x1a] sm:$0xff]  ;;  %s1565_s7 = smov 20  }
  0x52   : > { %460 = vst.msk [vmem:[#allocation2 + $0x78] sm:$0x1] %vm454_vm1, %v1562_v18  ;;  %462 = vst.msk [vmem:[#allocation2 + $0x29] sm:$0x1] %vm454_vm1, %v1562_v18  ;;  %599 = vrot.lane.b32.xlu1 %v582_v16, %s1563_s23  ;;  %v631_v29 = vld [vmem:[#allocation2 + $0x21] sm:$0xff]  ;;  %s1566_s11 = smov 24  }
  0x53   : > { %463 = vst.msk [vmem:[#allocation2 + $0x41] sm:$0x1] %vm454_vm1, %v1562_v18  ;;  %464 = vst.msk [vmem:[#allocation2 + $0x59] sm:$0x1] %vm454_vm1, %v1562_v18  ;;  %501 = vrot.lane.b32.xlu0 %v484_v17, %s1561_s20  ;;  %v778_v31 = vld [vmem:[#allocation2 + $0x31] sm:$0xff]  ;;  %vm914_vm2 = vcmask 1043456  }
  0x54   : > { %465 = vst.msk [vmem:[#allocation2 + $0x71] sm:$0x1] %vm454_vm1, %v1562_v18  ;;  %466 = vst.msk [vmem:[#allocation2 + $0x89] sm:$0x1] %vm454_vm1, %v1562_v18  ;;  %v888_v32 = vld [vmem:[%s1999_s3 + $0x20] sm:$0xf] }
  0x55   : > { %482 = vst.msk [vmem:[#allocation3 + $0x38] sm:$0xff] %vm415_vm0, %v1749_v20  ;;  %476 = vst.msk [vmem:[#allocation3 + $0x8] sm:$0xff] %vm415_vm0, %v468_v21  ;;  %v533_v22 = vld [vmem:[#allocation2 + $0xa] sm:$0xff]  ;;  %v467_v27 = vld [vmem:[#allocation2] sm:$0xff]  ;;  %s1567_s8 = smov 28   ;;  %1350 = vmatprep.subr.msk.mxu0 %vm914_vm2, %v888_v32  ;;  %1372 = vmatprep.subr.msk.mxu1 %vm914_vm2, %v888_v32  ;;  %s1568_s30 = smov 32  }
  0x56   : > { %v581_v23 = vld [vmem:[#allocation2 + $0x18] sm:$0xff]  ;;  %v729_v24 = vld [vmem:[#allocation2 + $0x30] sm:$0xff]  ;;  %550 = vrot.lane.b32.xlu1 %v533_v22, %s1560_s0  ;;  %475 = vst.msk [vmem:[#allocation3] sm:$0xff] %vm415_vm0, %v467_v27  ;;  %1351 = vmatpush3.msk.msra.mxu0 %vm914_vm2, %v888_v32  ;;  %v885_v37 = vld [vmem:[%s1999_s3 + $0x8] sm:$0xff]  ;;  %vm523_vm3 = vcmask 64544   ;;  %vm572_vm4 = vcmask 97344  }
  0x57   : > { %597 = vrot.lane.b32.xlu0 %v581_v23, %s1563_s23  ;;  %477 = vst.msk [vmem:[#allocation3 + $0x10] sm:$0xff] %vm415_vm0, %v581_v23  ;;  %479 = vst.msk [vmem:[#allocation3 + $0x20] sm:$0xff] %vm415_vm0, %v729_v24  ;;  %v887_v33 = vld [vmem:[%s1999_s3 + $0x18] sm:$0xff]  ;;  %1377 = vmatpush3.msk.msra.mxu1 %vm914_vm2, %v888_v32  ;;  %v886_v34 = vld [vmem:[%s1999_s3 + $0x10] sm:$0xff]  ;;  %vm621_vm5 = vcmask 130144   ;;  %vm670_vm6 = vcmask 162944  }
  0x58   : > { %v1758_v25 = vld [vmem:[#allocation2 + $0x48] sm:$0xff]  ;;  %1352 = vmatprep.subr.mxu0 %v887_v33  ;;  %1373 = vmatprep.subr.mxu1 %v887_v33  ;;  %v827_v35 = vld [vmem:[#allocation2 + $0x32] sm:$0xff]  ;;  %v884_v38 = vld [vmem:[%s1999_s3] sm:$0xff]  ;;  %vm719_vm7 = vcmask 195744   ;;  %vm769_vm8 = vcmask 228544   ;;  %vm818_vm9 = vcmask 261344  }
  0x59   : > { %481 = vst.msk [vmem:[#allocation3 + $0x30] sm:$0xff] %vm415_vm0, %v1758_v25  ;;  %v680_v30 = vld [vmem:[#allocation2 + $0x22] sm:$0xff]  ;;  %v779_v36 = vld [vmem:[#allocation2 + $0x39] sm:$0xff]  ;;  %1353 = vmatpush3.msra.mxu0 %v887_v33  ;;  %1378 = vmatpush3.msra.mxu1 %v887_v33  ;;  %v829_v41 = vld [vmem:[#allocation2 + $0x4a] sm:$0xff]  ;;  %vm867_vm10 = vcmask 294144   ;;  %vm889_vm11 = vcmask 293888  }
  0x5a   : > { %503 = vrot.lane.b32.xlu1 %v485_v26, %s1561_s20  ;;  %1354 = vmatprep.subr.mxu0 %v886_v34  ;;  %v828_v39 = vld [vmem:[#allocation2 + $0x3a] sm:$0xff]  ;;  %v780_v40 = vld [vmem:[#allocation2 + $0x49] sm:$0xff]  ;;  %v781_v42 = vld [vmem:[#allocation2 + $0x51] sm:$0xff]  ;;  %vm1023_vm12 = vcmask 64512   ;;  %vm1053_vm13 = vcmask 57344  }
  0x5b   : > { %646 = vrot.lane.b32.xlu0 %v485_v26, %s1564_s24  ;;  %1374 = vmatprep.subr.mxu1 %v886_v34  ;;  %v830_v43 = vld [vmem:[#allocation2 + $0x52] sm:$0xff]  ;;  %v733_v44 = vld [vmem:[#allocation2 + $0x60] sm:$0xff]  ;;  %v734_v45 = vld [vmem:[#allocation2 + $0x68] sm:$0xff] }
  0x5c   : > { %1355 = vmatpush3.msra.mxu0 %v886_v34  ;;  %1379 = vmatpush3.msra.mxu1 %v886_v34  ;;  %v782_v46 = vld [vmem:[#allocation2 + $0x61] sm:$0xff]  ;;  %v783_v47 = vld [vmem:[#allocation2 + $0x69] sm:$0xff]  ;;  %v735_v52 = vld [vmem:[#allocation2 + $0x78] sm:$0xff] }
  0x5d   : > { %1356 = vmatprep.subr.mxu0 %v885_v37  ;;  %1375 = vmatprep.subr.mxu1 %v885_v37  ;;  %v831_v48 = vld [vmem:[#allocation2 + $0x62] sm:$0xff]  ;;  %v832_v49 = vld [vmem:[#allocation2 + $0x6a] sm:$0xff]  ;;  %v784_v56 = vld [vmem:[#allocation2 + $0x79] sm:$0xff] }
  0x5e   : > { %695 = vrot.lane.b32.xlu1 %v679_v28, %s1565_s7  ;;  %1357 = vmatpush3.msra.mxu0 %v885_v37  ;;  %v736_v53 = vld [vmem:[#allocation2 + $0x80] sm:$0xff] }
  0x5f   : > { %648 = vrot.lane.b32.xlu0 %v631_v29, %s1564_s24  ;;  %1380 = vmatpush3.msra.mxu1 %v885_v37  ;;  %v785_v57 = vld [vmem:[#allocation2 + $0x81] sm:$0xff] }
  0x60   : > { %1358 = vmatprep.subr.mxu0 %v884_v38  ;;  %1376 = vmatprep.subr.mxu1 %v884_v38  ;;  %v833_v58 = vld [vmem:[#allocation2 + $0x7a] sm:$0xff]  ;;  %v834_v59 = vld [vmem:[#allocation2 + $0x82] sm:$0xff] }
  0x61   : > { %1359 = vmatpush3.msra.mxu0 %v884_v38  ;;  %1381 = vmatpush3.msra.mxu1 %v884_v38 }
  0x62   : > { %552 = vrot.lane.b32.xlu1 %v679_v28, %s1560_s0 }
  0x63   : > { %505 = vrot.lane.b32.xlu0 %v631_v29, %s1561_s20 }
  0x66   : > { %745 = vrot.lane.b32.xlu1 %v729_v24, %s1566_s11 }
  0x67   : > { %697 = vrot.lane.b32.xlu0 %v680_v30, %s1565_s7 }
  0x6a   : > { %601 = vrot.lane.b32.xlu1 %v729_v24, %s1563_s23 }
  0x6b   : > { %554 = vrot.lane.b32.xlu0 %v680_v30, %s1560_s0 }
  0x6e   : > { %794 = vrot.lane.b32.xlu1 %v778_v31, %s1567_s8 }
  0x6f   : > { %747 = vrot.lane.b32.xlu0 %v730_v19, %s1566_s11 }
  0x72   : > { %650 = vrot.lane.b32.xlu1 %v778_v31, %s1564_s24 }
  0x73   : > { %603 = vrot.lane.b32.xlu0 %v730_v19, %s1563_s23 }
  0x76   : > { %843 = vrot.lane.b32.xlu1 %v827_v35, %s1568_s30 }
  0x77   : > { %796 = vrot.lane.b32.xlu0 %v779_v36, %s1567_s8 }
  0x7a   : > { %652 = vrot.lane.b32.xlu1 %v779_v36, %s1564_s24 }
  0x7b   : > { %507 = vrot.lane.b32.xlu0 %v778_v31, %s1561_s20 }
  0x7e   : > { %845 = vrot.lane.b32.xlu1 %v828_v39, %s1568_s30 }
  0x7f   : > { %699 = vrot.lane.b32.xlu0 %v827_v35, %s1565_s7 }
  0x82   : > { %556 = vrot.lane.b32.xlu1 %v827_v35, %s1560_s0 }
  0x83   : > { %509 = vrot.lane.b32.xlu0 %v779_v36, %s1561_s20 }
  0x86   : > { %749 = vrot.lane.b32.xlu1 %v1758_v25, %s1566_s11 }
  0x87   : > { %701 = vrot.lane.b32.xlu0 %v828_v39, %s1565_s7 }
  0x8a   : > { %605 = vrot.lane.b32.xlu1 %v1758_v25, %s1563_s23 }
  0x8b   : > { %558 = vrot.lane.b32.xlu0 %v828_v39, %s1560_s0 }
  0x8e   : > { %798 = vrot.lane.b32.xlu1 %v780_v40, %s1567_s8 }
  0x8f   : > { %751 = vrot.lane.b32.xlu0 %v1749_v20, %s1566_s11 }
  0x92   : > { %654 = vrot.lane.b32.xlu1 %v780_v40, %s1564_s24 }
  0x93   : > { %607 = vrot.lane.b32.xlu0 %v1749_v20, %s1563_s23 }
  0x96   : > { %847 = vrot.lane.b32.xlu1 %v829_v41, %s1568_s30 }
  0x97   : > { %800 = vrot.lane.b32.xlu0 %v781_v42, %s1567_s8 }
  0x9a   : > { %656 = vrot.lane.b32.xlu1 %v781_v42, %s1564_s24 }
  0x9b   : > { %511 = vrot.lane.b32.xlu0 %v780_v40, %s1561_s20 }
  0x9e   : > { %849 = vrot.lane.b32.xlu1 %v830_v43, %s1568_s30 }
  0x9f   : > { %703 = vrot.lane.b32.xlu0 %v829_v41, %s1565_s7 }
  0xa2   : > { %560 = vrot.lane.b32.xlu1 %v829_v41, %s1560_s0 }
  0xa3   : > { %513 = vrot.lane.b32.xlu0 %v781_v42, %s1561_s20  ;;  %s1115_s20 = sshll.u32 %s1719_s18, 4  ;;  %s1116_s20 = int_to_ptr.vmem [resolvable:$true] %s1115_s20 }
  0xa4   : > { %s1464_s14 = scalar_lea.vmem %s1116_s20, 32 }
  0xa5   : > { %p1465_p9 = scmp.ne.s32.totalorder %s1116_s20, %s1464_s14 }
  0xa6   : > { %753 = vrot.lane.b32.xlu1 %v733_v44, %s1566_s11 }
  0xa7   : > { %705 = vrot.lane.b32.xlu0 %v830_v43, %s1565_s7  ;;  %p1466_p10 = pnand %p1465_p9, %p1651_p3 }
  0xa9   : > { %p1467_p11 = pneg %p1466_p10 }
  0xaa   : > { %609 = vrot.lane.b32.xlu1 %v733_v44, %s1563_s23 }
  0xab   : > { %562 = vrot.lane.b32.xlu0 %v830_v43, %s1560_s0 }
  0xae   : > { %802 = vrot.lane.b32.xlu1 %v782_v46, %s1567_s8 }
  0xaf   : > { %755 = vrot.lane.b32.xlu0 %v734_v45, %s1566_s11 }
  0xb2   : > { %658 = vrot.lane.b32.xlu1 %v782_v46, %s1564_s24 }
  0xb3   : > { %611 = vrot.lane.b32.xlu0 %v734_v45, %s1563_s23 }
  0xb6   : > { %851 = vrot.lane.b32.xlu1 %v831_v48, %s1568_s30 }
  0xb7   : > { %804 = vrot.lane.b32.xlu0 %v783_v47, %s1567_s8 }
  0xba   : > { %707 = vrot.lane.b32.xlu1 %v831_v48, %s1565_s7 }
  0xbb   : > { %660 = vrot.lane.b32.xlu0 %v783_v47, %s1564_s24 }
  0xbe   : > { %709 = vrot.lane.b32.xlu1 %v832_v49, %s1565_s7  ;;  %s2023_s7 = sand.u32 1, %s1532_s19  }
  0xbf   : > { %853 = vrot.lane.b32.xlu0 %v832_v49, %s1568_s30 }
  0xc0   : > { %v549_v50 = vpop.permute.xlu1 %548 }
  0xc1   : > { %v500_v51 = vpop.permute.xlu0 %499 }
  0xc2   : > { %524 = vst.msk [vmem:[#allocation3] sm:$0xff] %vm523_vm3, %v500_v51  ;;  %759 = vrot.lane.b32.xlu1 %v736_v53, %s1566_s11 }
  0xc3   : > { %573 = vst.msk [vmem:[#allocation3] sm:$0xff] %vm572_vm4, %v549_v50  ;;  %757 = vrot.lane.b32.xlu0 %v735_v52, %s1566_s11  ;;  %s1096_s11 = scalar_lea.sflag [#allocation5], %s2023_s7 }
  0xc4   : > { %v600_v54 = vpop.permute.xlu1 %599 }
  0xc5   : > { %v502_v55 = vpop.permute.xlu0 %501 }
  0xc6   : > { %525 = vst.msk [vmem:[#allocation3 + $0x8] sm:$0xff] %vm523_vm3, %v502_v55  ;;  %808 = vrot.lane.b32.xlu1 %v785_v57, %s1567_s8 }
  0xc7   : > { %806 = vrot.lane.b32.xlu0 %v784_v56, %s1567_s8 }
  0xc8   : > { %v551_v60 = vpop.permute.xlu1 %550 }
  0xc9   : > { %v598_v61 = vpop.permute.xlu0 %597  ;;  %574 = vst.msk [vmem:[#allocation3 + $0x8] sm:$0xff] %vm572_vm4, %v551_v60 }
  0xca   : > { %622 = vst.msk [vmem:[#allocation3] sm:$0xff] %vm621_vm5, %v598_v61  ;;  %623 = vst.msk [vmem:[#allocation3 + $0x8] sm:$0xff] %vm621_vm5, %v600_v54  ;;  %857 = vrot.lane.b32.xlu1 %v834_v59, %s1568_s30 }
  0xcb   : > { %855 = vrot.lane.b32.xlu0 %v833_v58, %s1568_s30 }
  0xcc   : > { %v504_v62 = vpop.permute.xlu1 %503 }
  0xcd   : > { %v647_v63 = vpop.permute.xlu0 %646  ;;  %526 = vst.msk [vmem:[#allocation3 + $0x10] sm:$0xff] %vm523_vm3, %v504_v62 }
  0xce   : > { %671 = vst.msk [vmem:[#allocation3] sm:$0xff] %vm670_vm6, %v647_v63 }
  0xd0   : > { %v696_v0 = vpop.permute.xlu1 %695 }
  0xd1   : > { %v649_v1 = vpop.permute.xlu0 %648  ;;  %720 = vst.msk [vmem:[#allocation3] sm:$0xff] %vm719_vm7, %v696_v0 }
  0xd2   : > { %672 = vst.msk [vmem:[#allocation3 + $0x8] sm:$0xff] %vm670_vm6, %v649_v1 }
  0xd4   : > { %v553_v2 = vpop.permute.xlu1 %552 }
  0xd5   : > { %v506_v3 = vpop.permute.xlu0 %505  ;;  %575 = vst.msk [vmem:[#allocation3 + $0x10] sm:$0xff] %vm572_vm4, %v553_v2 }
  0xd6   : > { %527 = vst.msk [vmem:[#allocation3 + $0x18] sm:$0xff] %vm523_vm3, %v506_v3 }
  0xd8   : > { %v746_v4 = vpop.permute.xlu1 %745 }
  0xd9   : > { %v698_v5 = vpop.permute.xlu0 %697  ;;  %770 = vst.msk [vmem:[#allocation3] sm:$0xff] %vm769_vm8, %v746_v4 }
  0xda   : > { %721 = vst.msk [vmem:[#allocation3 + $0x8] sm:$0xff] %vm719_vm7, %v698_v5 }
  0xdc   : > { %v602_v6 = vpop.permute.xlu1 %601 }
  0xdd   : > { %v555_v7 = vpop.permute.xlu0 %554  ;;  %624 = vst.msk [vmem:[#allocation3 + $0x10] sm:$0xff] %vm621_vm5, %v602_v6 }
  0xde   : > { %576 = vst.msk [vmem:[#allocation3 + $0x18] sm:$0xff] %vm572_vm4, %v555_v7 }
  0xe0   : > { %v795_v8 = vpop.permute.xlu1 %794 }
  0xe1   : > { %v748_v9 = vpop.permute.xlu0 %747  ;;  %819 = vst.msk [vmem:[#allocation3] sm:$0xff] %vm818_vm9, %v795_v8 }
  0xe2   : > { %771 = vst.msk [vmem:[#allocation3 + $0x8] sm:$0xff] %vm769_vm8, %v748_v9 }
  0xe4   : > { %v651_v10 = vpop.permute.xlu1 %650 }
  0xe5   : > { %v604_v11 = vpop.permute.xlu0 %603  ;;  %673 = vst.msk [vmem:[#allocation3 + $0x10] sm:$0xff] %vm670_vm6, %v651_v10 }
  0xe6   : > { %625 = vst.msk [vmem:[#allocation3 + $0x18] sm:$0xff] %vm621_vm5, %v604_v11 }
  0xe8   : > { %v844_v12 = vpop.permute.xlu1 %843 }
  0xe9   : > { %v797_v13 = vpop.permute.xlu0 %796  ;;  %868 = vst.msk [vmem:[#allocation3] sm:$0xff] %vm867_vm10, %v844_v12 }
  0xea   : > { %820 = vst.msk [vmem:[#allocation3 + $0x8] sm:$0xff] %vm818_vm9, %v797_v13 }
  0xec   : > { %v653_v14 = vpop.permute.xlu1 %652 }
  0xed   : > { %v508_v15 = vpop.permute.xlu0 %507  ;;  %674 = vst.msk [vmem:[#allocation3 + $0x18] sm:$0xff] %vm670_vm6, %v653_v14 }
  0xee   : > { %528 = vst.msk [vmem:[#allocation3 + $0x20] sm:$0xff] %vm523_vm3, %v508_v15 }
  0xf0   : > { %v846_v16 = vpop.permute.xlu1 %845  ;;  %v876_v18 = vld [vmem:[#allocation3] sm:$0xff] }
  0xf1   : > { %v700_v17 = vpop.permute.xlu0 %699  ;;  %869 = vst.msk [vmem:[#allocation3 + $0x8] sm:$0xff] %vm867_vm10, %v846_v16  ;;  %1360 = vmatprep.mubr.msk.f32.mxu0 %vm889_vm11, %v876_v18 }
  0xf2   : > { %722 = vst.msk [vmem:[#allocation3 + $0x10] sm:$0xff] %vm719_vm7, %v700_v17 }
  0xf4   : > { %v557_v19 = vpop.permute.xlu1 %556 }
  0xf5   : > { %v510_v20 = vpop.permute.xlu0 %509  ;;  %577 = vst.msk [vmem:[#allocation3 + $0x20] sm:$0xff] %vm572_vm4, %v557_v19 }
  0xf6   : > { %529 = vst.msk [vmem:[#allocation3 + $0x28] sm:$0xff] %vm523_vm3, %v510_v20 }
  0xf8   : > { %v750_v21 = vpop.permute.xlu1 %749  ;;  %v877_v23 = vld [vmem:[#allocation3 + $0x8] sm:$0xff] }
  0xf9   : > { %v702_v22 = vpop.permute.xlu0 %701  ;;  %772 = vst.msk [vmem:[#allocation3 + $0x10] sm:$0xff] %vm769_vm8, %v750_v21  ;;  %1361 = vmatmul.mubr.msk.f32.vlgmr.msra.gmra.mxu0 %vm889_vm11, %v877_v23 }
  0xfa   : > { %723 = vst.msk [vmem:[#allocation3 + $0x18] sm:$0xff] %vm719_vm7, %v702_v22 }
  0xfc   : > { %v606_v24 = vpop.permute.xlu1 %605 }
  0xfd   : > { %v559_v25 = vpop.permute.xlu0 %558  ;;  %626 = vst.msk [vmem:[#allocation3 + $0x20] sm:$0xff] %vm621_vm5, %v606_v24 }
  0xfe   : > { %578 = vst.msk [vmem:[#allocation3 + $0x28] sm:$0xff] %vm572_vm4, %v559_v25 }
 0x100   : > { %v799_v26 = vpop.permute.xlu1 %798 }
 0x101   : > { %v752_v27 = vpop.permute.xlu0 %751  ;;  %821 = vst.msk [vmem:[#allocation3 + $0x10] sm:$0xff] %vm818_vm9, %v799_v26 }
 0x102   : > { %773 = vst.msk [vmem:[#allocation3 + $0x18] sm:$0xff] %vm769_vm8, %v752_v27 }
 0x104   : > { %v655_v28 = vpop.permute.xlu1 %654 }
 0x105   : > { %v608_v29 = vpop.permute.xlu0 %607  ;;  %675 = vst.msk [vmem:[#allocation3 + $0x20] sm:$0xff] %vm670_vm6, %v655_v28 }
 0x106   : > { %627 = vst.msk [vmem:[#allocation3 + $0x28] sm:$0xff] %vm621_vm5, %v608_v29 }
 0x108   : > { %v848_v30 = vpop.permute.xlu1 %847 }
 0x109   : > { %v801_v31 = vpop.permute.xlu0 %800  ;;  %870 = vst.msk [vmem:[#allocation3 + $0x10] sm:$0xff] %vm867_vm10, %v848_v30 }
 0x10a   : > { %822 = vst.msk [vmem:[#allocation3 + $0x18] sm:$0xff] %vm818_vm9, %v801_v31 }
 0x10c   : > { %v657_v32 = vpop.permute.xlu1 %656 }
 0x10d   : > { %v512_v33 = vpop.permute.xlu0 %511  ;;  %676 = vst.msk [vmem:[#allocation3 + $0x28] sm:$0xff] %vm670_vm6, %v657_v32 }
 0x10e   : > { %530 = vst.msk [vmem:[#allocation3 + $0x30] sm:$0xff] %vm523_vm3, %v512_v33 }
 0x110   : > { %v850_v34 = vpop.permute.xlu1 %849  ;;  %v878_v36 = vld [vmem:[#allocation3 + $0x10] sm:$0xff] }
 0x111   : > { %v704_v35 = vpop.permute.xlu0 %703  ;;  %871 = vst.msk [vmem:[#allocation3 + $0x18] sm:$0xff] %vm867_vm10, %v850_v34  ;;  %1363 = vmatprep.mubr.msk.f32.mxu0 %vm889_vm11, %v878_v36 }
 0x112   : > { %724 = vst.msk [vmem:[#allocation3 + $0x20] sm:$0xff] %vm719_vm7, %v704_v35 }
 0x114   : > { %v561_v38 = vpop.permute.xlu1 %560 }
 0x115   : > { %v514_v37 = vpop.permute.xlu0 %513  ;;  %579 = vst.msk [vmem:[#allocation3 + $0x30] sm:$0xff] %vm572_vm4, %v561_v38 }
 0x116   : > { %531 = vst.msk [vmem:[#allocation3 + $0x38] sm:$0xff] %vm523_vm3, %v514_v37 }
 0x118   : > { %v754_v40 = vpop.permute.xlu1 %753  ;;  %v879_v41 = vld [vmem:[#allocation3 + $0x18] sm:$0xff] }
 0x119   : > { %v706_v39 = vpop.permute.xlu0 %705  ;;  %774 = vst.msk [vmem:[#allocation3 + $0x20] sm:$0xff] %vm769_vm8, %v754_v40  ;;  %1364 = vmatmul.mubr.msk.f32.gmra.mxu0 %vm889_vm11, %v879_v41 }
 0x11a   : > { %725 = vst.msk [vmem:[#allocation3 + $0x28] sm:$0xff] %vm719_vm7, %v706_v39 }
 0x11c   : > { %v610_v43 = vpop.permute.xlu1 %609 }
 0x11d   : > { %v563_v42 = vpop.permute.xlu0 %562  ;;  %628 = vst.msk [vmem:[#allocation3 + $0x30] sm:$0xff] %vm621_vm5, %v610_v43 }
 0x11e   : > { %580 = vst.msk [vmem:[#allocation3 + $0x38] sm:$0xff] %vm572_vm4, %v563_v42 }
 0x120   : > { %v803_v45 = vpop.permute.xlu1 %802 }
 0x121   : > { %v756_v44 = vpop.permute.xlu0 %755  ;;  %823 = vst.msk [vmem:[#allocation3 + $0x20] sm:$0xff] %vm818_vm9, %v803_v45 }
 0x122   : > { %775 = vst.msk [vmem:[#allocation3 + $0x28] sm:$0xff] %vm769_vm8, %v756_v44 }
 0x124   : > { %v659_v47 = vpop.permute.xlu1 %658 }
 0x125   : > { %v612_v46 = vpop.permute.xlu0 %611  ;;  %677 = vst.msk [vmem:[#allocation3 + $0x30] sm:$0xff] %vm670_vm6, %v659_v47 }
 0x126   : > { %629 = vst.msk [vmem:[#allocation3 + $0x38] sm:$0xff] %vm621_vm5, %v612_v46 }
 0x128   : > { %v852_v49 = vpop.permute.xlu1 %851 }
 0x129   : > { %v805_v48 = vpop.permute.xlu0 %804  ;;  %872 = vst.msk [vmem:[#allocation3 + $0x20] sm:$0xff] %vm867_vm10, %v852_v49 }
 0x12a   : > { %824 = vst.msk [vmem:[#allocation3 + $0x28] sm:$0xff] %vm818_vm9, %v805_v48 }
 0x12c   : > { %v708_v51 = vpop.permute.xlu1 %707 }
 0x12d   : > { %v661_v50 = vpop.permute.xlu0 %660  ;;  %726 = vst.msk [vmem:[#allocation3 + $0x30] sm:$0xff] %vm719_vm7, %v708_v51 }
 0x12e   : > { %678 = vst.msk [vmem:[#allocation3 + $0x38] sm:$0xff] %vm670_vm6, %v661_v50 }
 0x130   : > { %v710_v53 = vpop.permute.xlu1 %709  ;;  %v880_v54 = vld [vmem:[#allocation3 + $0x20] sm:$0xff] }
 0x131   : > { %v854_v52 = vpop.permute.xlu0 %853  ;;  %727 = vst.msk [vmem:[#allocation3 + $0x38] sm:$0xff] %vm719_vm7, %v710_v53  ;;  %1366 = vmatprep.mubr.msk.f32.mxu1 %vm889_vm11, %v880_v54 }
 0x132   : > { %873 = vst.msk [vmem:[#allocation3 + $0x28] sm:$0xff] %vm867_vm10, %v854_v52 }
 0x134   : > { %v760_v56 = vpop.permute.xlu1 %759 }
 0x135   : > { %v758_v55 = vpop.permute.xlu0 %757  ;;  %777 = vst.msk [vmem:[#allocation3 + $0x38] sm:$0xff] %vm769_vm8, %v760_v56 }
 0x136   : > { %776 = vst.msk [vmem:[#allocation3 + $0x30] sm:$0xff] %vm769_vm8, %v758_v55 }
 0x138   : > { %v809_v58 = vpop.permute.xlu1 %808 }
 0x139   : > { %v807_v57 = vpop.permute.xlu0 %806  ;;  %v881_v59 = vld [vmem:[#allocation3 + $0x28] sm:$0xff]  ;;  %826 = vst.msk [vmem:[#allocation3 + $0x38] sm:$0xff] %vm818_vm9, %v809_v58 }
 0x13a   : > { %825 = vst.msk [vmem:[#allocation3 + $0x30] sm:$0xff] %vm818_vm9, %v807_v57  ;;  %1367 = vmatmul.mubr.msk.f32.vlgmr.msra.gmra.mxu1 %vm889_vm11, %v881_v59 }
 0x13c   : > { %v858_v61 = vpop.permute.xlu1 %857 }
 0x13d   : > { %v856_v60 = vpop.permute.xlu0 %855  ;;  %875 = vst.msk [vmem:[#allocation3 + $0x38] sm:$0xff] %vm867_vm10, %v858_v61 }
 0x13e   : > { %874 = vst.msk [vmem:[#allocation3 + $0x30] sm:$0xff] %vm867_vm10, %v856_v60 }
 0x144   : > { %v883_v63 = vld [vmem:[#allocation3 + $0x38] sm:$0xff] }
 0x145   : > { %v882_v62 = vld [vmem:[#allocation3 + $0x30] sm:$0xff] }
 0x146   : > { %1369 = vmatprep.mubr.msk.f32.mxu1 %vm889_vm11, %v882_v62 }
 0x147   : > { %1370 = vmatmul.mubr.msk.f32.gmra.mxu1 %vm889_vm11, %v883_v63 }
 0x1b9   : > { %v1362_v0 = vpop.f32.mrf.mxu0 }
 0x1ba   : > { %1025 = vst.msk [vmem:[%s1708_s26 + $0x8] sm:$0xff] %vm1023_vm12, %v1362_v0  ;;  %v1033_v1 = vsel %vm1023_vm12, %v1362_v0, 0.0  ;;  %v1056_v2 = vmul.f32 %v1362_v0, %v1362_v0 }
 0x1bb   : > { %v984_v3 = vpop.f32.mrf.mxu0 }
 0x1bc   : > { %v1064_v4 = vsel %vm1023_vm12, %v1056_v2, 0.0  ;;  %1024 = vst.msk [vmem:[%s1708_s26] sm:$0xff] %vm1023_vm12, %v984_v3  ;;  %v1032_v5 = vsel %vm1023_vm12, %v984_v3, 0.0  ;;  %v1055_v6 = vmul.f32 %v984_v3, %v984_v3 }
 0x1bd   : > { %v1034_v7 = vadd.f32 %v1033_v1, %v1032_v5 }
 0x1be   : > { %v1063_v8 = vsel %vm1023_vm12, %v1055_v6, 0.0 }
 0x1bf   : > { %v1065_v9 = vadd.f32 %v1064_v4, %v1063_v8 }
 0x1d9   : > { %v1365_v10 = vpop.f32.mrf.mxu0 }
 0x1da   : > { %1027 = vst.msk [vmem:[%s1708_s26 + $0x18] sm:$0xff] %vm1023_vm12, %v1365_v10  ;;  %v1058_v18 = vmul.f32 %v1365_v10, %v1365_v10  ;;  %v1037_v21 = vsel %vm1023_vm12, %v1365_v10, 0.0 }
 0x1db   : > { %v994_v11 = vpop.f32.mrf.mxu0 }
 0x1dc   : > { %1026 = vst.msk [vmem:[%s1708_s26 + $0x10] sm:$0xff] %vm1023_vm12, %v994_v11  ;;  %v1057_v12 = vmul.f32 %v994_v11, %v994_v11  ;;  %v1035_v14 = vsel %vm1023_vm12, %v994_v11, 0.0  ;;  %v1068_v24 = vsel %vm1023_vm12, %v1058_v18, 0.0 }
 0x1dd   : > { %v1036_v17 = vadd.f32 %v1035_v14, %v1034_v7 }
 0x1de   : > { %v1066_v16 = vsel %vm1023_vm12, %v1057_v12, 0.0 }
 0x1df   : > { %v1067_v20 = vadd.f32 %v1066_v16, %v1065_v9  ;;  %v1038_v23 = vadd.f32 %v1037_v21, %v1036_v17 }
 0x1e1   : > { %v1069_v26 = vadd.f32 %v1068_v24, %v1067_v20 }
 0x1fa   : > { %v1368_v13 = vpop.f32.mrf.mxu1 }
 0x1fb   : > { %1029 = vst.msk [vmem:[%s1708_s26 + $0x28] sm:$0xff] %vm1023_vm12, %v1368_v13  ;;  %v1060_v28 = vmul.f32 %v1368_v13, %v1368_v13  ;;  %v1041_v31 = vsel %vm1023_vm12, %v1368_v13, 0.0 }
 0x1fc   : > { %v1004_v15 = vpop.f32.mrf.mxu1 }
 0x1fd   : > { %1028 = vst.msk [vmem:[%s1708_s26 + $0x20] sm:$0xff] %vm1023_vm12, %v1004_v15  ;;  %v1059_v19 = vmul.f32 %v1004_v15, %v1004_v15  ;;  %v1039_v22 = vsel %vm1023_vm12, %v1004_v15, 0.0  ;;  %v1072_v34 = vsel %vm1023_vm12, %v1060_v28, 0.0 }
 0x1fe   : > { %v1040_v27 = vadd.f32 %v1039_v22, %v1038_v23 }
 0x1ff   : > { %v1070_v25 = vsel %vm1023_vm12, %v1059_v19, 0.0 }
 0x200   : > { %v1071_v29 = vadd.f32 %v1070_v25, %v1069_v26  ;;  %v1042_v33 = vadd.f32 %v1041_v31, %v1040_v27 }
 0x202   : > { %v1073_v39 = vadd.f32 %v1072_v34, %v1071_v29 }
 0x207   : > { %v1371_v30 = vpop.f32.mrf.mxu1 }
 0x208   : > { %1031 = vst.msk [vmem:[%s1708_s26 + $0x38] sm:$0xff] %vm1023_vm12, %v1371_v30  ;;  %v1062_v35 = vmul.f32 %v1371_v30, %v1371_v30  ;;  %v1045_v40 = vsel %vm1023_vm12, %v1371_v30, 0.0 }
 0x209   : > { %v1014_v32 = vpop.f32.mrf.mxu1 }
 0x20a   : > { %1030 = vst.msk [vmem:[%s1708_s26 + $0x30] sm:$0xff] %vm1023_vm12, %v1014_v32  ;;  %v1043_v36 = vsel %vm1023_vm12, %v1014_v32, 0.0  ;;  %v1061_v37 = vmul.f32 %v1014_v32, %v1014_v32  ;;  %v1076_v44 = vsel %vm1023_vm12, %v1062_v35, 0.0  ;;  %s1331_s26 = sshll.u32 %s1544_s22, 2 }
 0x20b   : > { %v1044_v38 = vadd.f32 %v1043_v36, %v1042_v33  ;;  %s1111_s28 = sadd.s32 %s1540_s21, %s1331_s26  ;;  %s1569_s21 = smov [#allocation4]  }
 0x20c   : > { %v1074_v41 = vsel %vm1023_vm12, %v1061_v37, 0.0  ;;  %s1332_s0 = sshll.u32 %s1111_s28, 5  ;;  %s1468_s17 = sshll.u32 %s1569_s21, 4  ;;  %s1469_s17 = int_to_ptr.vmem [resolvable:$false] %s1468_s17 }
 0x20d   : > { %v1046_v42 = vadd.f32 %v1045_v40, %v1044_v38  ;;  %v1075_v43 = vadd.f32 %v1074_v41, %v1073_v39  ;;  %s1113_s22 = scalar_lea.hbm %s2001_s5, %s1332_s0  ;;  %s1470_s8 = scalar_lea.vmem %s1469_s17, 64 }
 0x20e   : > { %p1471_p12 = scmp.lt.s32.totalorder %s1116_s20, %s1469_s17  ;;  %p1472_p13 = scmp.lt.s32.totalorder %s1470_s8, %s1464_s14 }
 0x20f   : > { %v1047_v45 = vrot.slane %v1046_v42, 4  ;;  %v1077_v46 = vadd.f32 %v1076_v44, %v1075_v43 }
 0x210   : > { %p1473_p0 = por %p1472_p13, %p1471_p12 }
 0x211   : > { %v1048_v47 = vadd.f32 %v1047_v45, %v1046_v42  ;;  %v1078_v48 = vrot.slane %v1077_v46, 4 }
 0x212   : > { %p1474_p1 = pnand %p1473_p0, %p1467_p11 }
 0x213   : > { %v1049_v49 = vrot.slane %v1048_v47, 2  ;;  %v1079_v50 = vadd.f32 %v1078_v48, %v1077_v46 }
 0x215   : > { %v1050_v51 = vadd.f32 %v1049_v49, %v1048_v47  ;;  %v1080_v52 = vrot.slane %v1079_v50, 2 }
 0x217   : > { %v1051_v53 = vrot.slane %v1050_v51, 1  ;;  %v1081_v54 = vadd.f32 %v1080_v52, %v1079_v50 }
 0x219   : > { %v1052_v55 = vadd.f32 %v1051_v53, %v1050_v51  ;;  %v1082_v56 = vrot.slane %v1081_v54, 1 }
 0x21b   : > { %1054 = vst.msk [vmem:[%s1719_s18] sm:$0x1] %vm1053_vm13, %v1052_v55  ;;  %v1083_v57 = vadd.f32 %v1082_v56, %v1081_v54 }
 0x21d   : > { %1084 = vst.msk [vmem:[%s1719_s18 + $0x1] sm:$0x1] %vm1053_vm13, %v1083_v57 }
 0x21e   : > { %1477 = shalt.err (!%p1474_p1)
}
 0x21f   : > { %s1478_s9 = scalar_lea.hbm %s1113_s22, 32  ;;  %s1482_s12 = scalar_lea.hbm %s2001_s5, 256 }
 0x220   : > { %p1479_p2 = scmp.ne.s32.totalorder %s1113_s22, %s1478_s9  ;;  %p1483_p6 = scmp.lt.s32.totalorder %s1113_s22, %s2001_s5 }
 0x221   : > { %p1484_p7 = scmp.lt.s32.totalorder %s1482_s12, %s1478_s9 }
 0x222   : > { %p1480_p4 = pnand %p1479_p2, %p1651_p3 }
 0x223   : > { %p1485_p9 = por %p1484_p7, %p1483_p6 }
 0x224   : > { %p1481_p5 = pneg %p1480_p4 }
 0x226   : > { %p1486_p10 = pnand %p1485_p9, %p1481_p5 }
 0x228   : > { %1489 = shalt.err (!%p1486_p10)
}
 0x229   : > { %1382 = dma.vmem_to_hbm [thread:$0]  (%p1651_p3), %s1116_s20, 32, %s1113_s22, %s1096_s11  }
 0x22a PF: > { %s2024_s27 = sld [smem:[#allocation7_spill]]  ;;  %p1388_p11 = scmp.ge.s32.totalorder %s1556_s25, 2 }
 0x22c   : > { %p1385_p12 = pnand %p1388_p11, %p1660_p8 }
 0x22e   : > { %p1386_p13 = pneg %p1385_p12 }
 0x230   : > { %s1140_s10 = sand.u32 1, %s2024_s27  }
 0x231   : > { %s1141_s29 = scalar_lea.sflag [#allocation5], %s1140_s10 }
 0x232   : > { %1523 = dma.done.wait (%p1386_p13), %s1141_s29, 32  }
 0x233   : > { %1525 = vsyncadd (%p1386_p13), %s1141_s29, 4294967264  ;;  %s19_s25 = sadd.s32 1, %s1556_s25   ;;  %s2026_s26 = sld [smem:[#allocation8_spill]] }
 0x234   : > { %p16_p0 = scmp.ge.s32.totalorder %s19_s25, 10   ;;  %s2027_s20 = sld [smem:[#allocation14_spill]] }
 0x235   : > { %s2028_s21 = sld [smem:[#allocation9_spill]]  ;;  %s2032_s18 = smov %s1532_s19 }
 0x236   : > { %s2029_s22 = sld [smem:[#allocation10_spill]]  ;;  %18 = sbr.rel (!%p16_p0) target bundleno = 7 (0x7), region = 109 }
 0x237   : > { %s2030_s23 = sld [smem:[#allocation11_spill]] }
 0x238   : > { %s2031_s24 = sld [smem:[#allocation12_spill]] }
 0x239   : > { %s2033_s19 = smov %s2026_s26 }
 0x23b   :  { %1146 = vsyncpa [#allocation5], 1 }
 0x23c   :  { %1148 = vsyncpa [#allocation5 + $0x1], 1 }

</bundles_post_ra>
